<compile_context>
chip_gen: v7x
topology: tpu7x:2x2x1
jax: 0.10.0
libtpu: 0.0.40
codegen_flags: <defaults>
</compile_context>

<pallas_src>
import jax
import jax.numpy as jnp
from jax.experimental import pallas as pl
from jax.experimental.pallas import tpu as pltpu


# ---------------------------------------------------------------------------
# Fused single-pass kernel: pool -> FC1 -> SiLU -> FC2 -> Sigmoid -> rescale.
# ---------------------------------------------------------------------------
def _make_fused_kernel(inv_hw: float):
    # inv_hw is a plain Python float -> traced as a literal (no captured const).
    def se_block_kernel(x_ref, w1t_ref, w2t_ref, o_ref):
        x = x_ref[...]                                            # (Bt, C, HW)
        # Squeeze: fp32-accumulated sum fused with the upcast.
        pooled = jnp.sum(x, axis=-1, dtype=jnp.float32) * inv_hw  # (Bt, C)
        # Excitation: FC1 -> SiLU -> FC2 -> Sigmoid (MXU consumes weight dtype
        # natively; fp32 accumulation).
        h = jnp.dot(pooled, w1t_ref[...], preferred_element_type=jnp.float32)
        h = h * jax.nn.sigmoid(h)                                 # SiLU
        y = jax.nn.sigmoid(
            jnp.dot(h, w2t_ref[...], preferred_element_type=jnp.float32))
        # Scale: broadcast per-(b, c) gate across the spatial lanes; x stays in
        # its input dtype end-to-end (HBM traffic = 1 read + 1 write of x).
        o_ref[...] = x * y.astype(x.dtype)[:, :, None]

    return se_block_kernel


# ---------------------------------------------------------------------------
# Fallback kernels (block too big for VMEM even at Bt = 1): spatially tiled.
# ---------------------------------------------------------------------------
def _make_pool_kernel(hw_total: int):
    def pool_kernel(x_ref, o_ref):
        h = pl.program_id(1)

        @pl.when(h == 0)
        def _():
            o_ref[...] = jnp.zeros_like(o_ref)

        x = x_ref[...]                                            # (1, C, Thw)
        tile_hw = x.shape[-1]
        # Mask lanes past the true spatial extent (partial last chunk reads
        # unspecified VMEM contents).
        lane = jax.lax.broadcasted_iota(jnp.int32, x.shape, 2) + h * tile_hw
        xf = jnp.where(lane < hw_total, x.astype(jnp.float32), 0.0)
        o_ref[...] += jnp.sum(xf, axis=-1, keepdims=True)         # (1, C, 1)

    return pool_kernel


def _scale_kernel(x_ref, gate_ref, o_ref):
    x = x_ref[...]                                                # (1, C, Thw)
    o_ref[...] = x * gate_ref[...].astype(x.dtype)                # (1, C, 1) bcast


# ---------------------------------------------------------------------------
# Budgeting helpers.
# ---------------------------------------------------------------------------
def _tpu_budget():
    """(target_block_bytes, vmem_limit_cap) sized per TPU generation."""
    vmem_cap = 64 << 20  # conservative default (v7x: 64 MiB VMEM per TC)
    try:
        vmem_cap = int(getattr(pltpu.get_tpu_info(),
                               "vmem_capacity_bytes", vmem_cap))
    except Exception:
        pass
    if vmem_cap <= (64 << 20):          # v7x-class
        return 6 << 20, 44 << 20
    return 12 << 20, 96 << 20            # v5e / v6e (128 MiB VMEM)


def _pick_batch_block(B, per_batch_bytes, target_bytes, min_grid=4):
    """Largest divisor Bt of B with Bt*per_batch_bytes <= target_bytes while
    keeping at least min(min_grid, B) grid steps (>= 2 steps per TensorCore on
    v7x when B permits).  Returns None if even Bt=1 does not fit."""
    fits = [bt for bt in range(1, B + 1)
            if B % bt == 0 and bt * per_batch_bytes <= target_bytes]
    if not fits:
        return None
    want = min(min_grid, B)
    good = [bt for bt in fits if (B // bt) >= want]
    return max(good) if good else max(fits)


# ---------------------------------------------------------------------------
# Wrapper.
# ---------------------------------------------------------------------------
def se_block(x_nchw, w1, w2, *, target_block_bytes=None, fallback_tile_hw=None):
    """SEBlock forward.

    x_nchw: (B, C, H, W)
    w1:     (hidden, C)   -- nn.Linear(C, hidden, bias=False).weight
    w2:     (C, hidden)   -- nn.Linear(hidden, C, bias=False).weight
    """
    B, C, H, W = x_nchw.shape
    hidden = w1.shape[0]
    HW = H * W

    x3 = x_nchw.reshape(B, C, HW)        # free reshape: HW -> lanes, C -> sublanes
    itemsize = jnp.dtype(x3.dtype).itemsize

    target, vmem_cap = _tpu_budget()
    if target_block_bytes is not None:
        target = int(target_block_bytes)

    # Pre-transpose weights once: kernel matmuls are (Bt,C)@(C,h) and (Bt,h)@(h,C).
    w1t = jnp.swapaxes(w1, 0, 1)         # (C, hidden)
    w2t = jnp.swapaxes(w2, 0, 1)         # (hidden, C)

    per_batch_bytes = C * HW * itemsize
    Bt = _pick_batch_block(B, per_batch_bytes, target)

    flops = 2 * B * C * HW + 4 * B * C * hidden
    transc = B * (hidden + C)
    bytes_x = 2 * B * C * HW * itemsize

    if Bt is not None:
        # -------- fused single-pass path: 1 HBM read + 1 HBM write of x ----
        # TODO(synk): for B == 1 on v7x, split HW across a second parallel grid
        # axis (two-phase pool/scale) so both TensorCores get work.
        grid_b = B // Bt
        block_bytes = Bt * per_batch_bytes
        w_bytes = 2 * C * hidden * jnp.dtype(w1.dtype).itemsize
        vmem_need = 4 * block_bytes + 2 * w_bytes + (2 << 20)
        vmem_limit = int(min(max(vmem_need, 32 << 20), vmem_cap))

        out3 = pl.pallas_call(
            _make_fused_kernel(1.0 / HW),
            out_shape=jax.ShapeDtypeStruct((B, C, HW), x3.dtype),
            grid_spec=pltpu.PrefetchScalarGridSpec(
                num_scalar_prefetch=0,
                grid=(grid_b,),
                in_specs=[
                    pl.BlockSpec((Bt, C, HW), lambda b: (b, 0, 0)),
                    pl.BlockSpec((C, hidden), lambda b: (0, 0)),
                    pl.BlockSpec((hidden, C), lambda b: (0, 0)),
                ],
                out_specs=pl.BlockSpec((Bt, C, HW), lambda b: (b, 0, 0)),
            ),
            compiler_params=pltpu.CompilerParams(
                dimension_semantics=("parallel",),
                vmem_limit_bytes=vmem_limit,
            ),
            cost_estimate=pl.CostEstimate(
                flops=flops, transcendentals=transc, bytes_accessed=bytes_x),
        )(x3, w1t, w2t)
        return out3.reshape(B, C, H, W)

    # -------- fallback: spatially tiled (3 HBM passes over x) --------------
    if fallback_tile_hw is not None:
        tile_hw = int(fallback_tile_hw)
    else:
        tile_hw = max(128, (target // max(1, C * itemsize)) // 128 * 128)
    if tile_hw >= HW:
        tile_hw = HW                      # full last dim is always legal
    n_hw = pl.cdiv(HW, tile_hw)

    tile_bytes = C * tile_hw * itemsize
    fb_vmem = int(min(max(4 * tile_bytes + (2 << 20), 32 << 20), vmem_cap))

    # Pass 1: pooled sums (accumulated across HW chunks).
    pooled = pl.pallas_call(
        _make_pool_kernel(HW),
        out_shape=jax.ShapeDtypeStruct((B, C, 1), jnp.float32),
        grid_spec=pltpu.PrefetchScalarGridSpec(
            num_scalar_prefetch=0,
            grid=(B, n_hw),
            in_specs=[pl.BlockSpec((1, C, tile_hw), lambda b, h: (b, 0, h))],
            out_specs=pl.BlockSpec((1, C, 1), lambda b, h: (b, 0, 0)),
        ),
        compiler_params=pltpu.CompilerParams(
            dimension_semantics=("parallel", "arbitrary"),
            vmem_limit_bytes=fb_vmem,
        ),
        cost_estimate=pl.CostEstimate(
            flops=B * C * HW, transcendentals=0,
            bytes_accessed=B * C * HW * itemsize),
    )(x3)

    # Excitation on the tiny (B, C) pooled tensor in plain JAX.
    p = pooled[:, :, 0] * (1.0 / HW)                              # (B, C) f32
    hdd = p @ w1t.astype(jnp.float32)                             # (B, hidden)
    hdd = hdd * jax.nn.sigmoid(hdd)                               # SiLU
    gate = jax.nn.sigmoid(hdd @ w2t.astype(jnp.float32))[:, :, None]  # (B, C, 1)

    # Pass 2: rescale x by the per-channel gate.
    out3 = pl.pallas_call(
        _scale_kernel,
        out_shape=jax.ShapeDtypeStruct((B, C, HW), x3.dtype),
        grid_spec=pltpu.PrefetchScalarGridSpec(
            num_scalar_prefetch=0,
            grid=(B, n_hw),
            in_specs=[
                pl.BlockSpec((1, C, tile_hw), lambda b, h: (b, 0, h)),
                pl.BlockSpec((1, C, 1), lambda b, h: (b, 0, 0)),
            ],
            out_specs=pl.BlockSpec((1, C, tile_hw), lambda b, h: (b, 0, h)),
        ),
        compiler_params=pltpu.CompilerParams(
            dimension_semantics=("parallel", "parallel"),
            vmem_limit_bytes=fb_vmem,
        ),
        cost_estimate=pl.CostEstimate(
            flops=B * C * HW, transcendentals=0,
            bytes_accessed=2 * B * C * HW * itemsize),
    )(x3, gate)
    return out3.reshape(B, C, H, W)


# ---------------------------------------------------------------------------
# Pure-JAX reference (matches the PyTorch forward: bias=False, SiLU, Sigmoid).
# ---------------------------------------------------------------------------
def se_block_ref(x, w1, w2):
    pooled = jnp.mean(x.astype(jnp.float32), axis=(2, 3))          # (B, C)
    h = pooled @ w1.T.astype(jnp.float32)                          # (B, hidden)
    h = h * jax.nn.sigmoid(h)                                      # SiLU
    y = jax.nn.sigmoid(h @ w2.T.astype(jnp.float32))               # (B, C)
    return x * y[:, :, None, None].astype(x.dtype)


if __name__ == "__main__":
    key = jax.random.PRNGKey(0)

    def make_inputs(B, C, H, W, reduction, dtype=jnp.float32):
        hidden = max(1, C // reduction)
        kx, k1, k2 = jax.random.split(key, 3)
        x = jax.random.normal(kx, (B, C, H, W), dtype=dtype)
        w1 = (0.1 * jax.random.normal(k1, (hidden, C))).astype(dtype)
        w2 = (0.1 * jax.random.normal(k2, (C, hidden))).astype(dtype)
        return x, w1, w2

    # 1) Fused single-pass path (HW = 256, a multiple of 128).
    x, w1, w2 = make_inputs(2, 32, 16, 16, reduction=4)
    out = jax.block_until_ready(se_block(x, w1, w2))
    ref = se_block_ref(x, w1, w2)
    assert out.shape == x.shape
    assert jnp.allclose(out, ref, atol=1e-5, rtol=1e-5)

    # 2) Fused path with HW not a multiple of 128 (no pad/slice HBM passes:
    #    the block's last dim equals the full array dim).
    x, w1, w2 = make_inputs(2, 32, 10, 10, reduction=4)
    out = jax.block_until_ready(se_block(x, w1, w2))
    ref = se_block_ref(x, w1, w2)
    assert jnp.allclose(out, ref, atol=1e-5, rtol=1e-5)

    # 3) Spatially-tiled fallback (forced with a tiny block budget), including
    #    a partial last spatial tile (HW = 160, tile = 128).
    x, w1, w2 = make_inputs(2, 32, 10, 16, reduction=4)
    out = jax.block_until_ready(
        se_block(x, w1, w2, target_block_bytes=4096, fallback_tile_hw=128))
    ref = se_block_ref(x, w1, w2)
    assert jnp.allclose(out, ref, atol=1e-5, rtol=1e-5)

    print("KERNEL_OK")
</pallas_src>

<mosaic_0001>
module attributes {stable_mosaic.version = 11 : i64} {
  func.func @se_block_kernel(%arg0: i32, %arg1: memref<1x32x256xf32, #tpu.memory_space<vmem>>, %arg2: memref<32x8xf32, #tpu.memory_space<vmem>>, %arg3: memref<8x32xf32, #tpu.memory_space<vmem>>, %arg4: memref<1x32x256xf32, #tpu.memory_space<vmem>>) attributes {dimension_semantics = [#tpu.dimension_semantics<parallel>], iteration_bounds = array<i64: 2>, scalar_prefetch = 0 : i64, scratch_operands = 0 : i64, tpu.core_type = #tpu.core_type<tc>, window_params = [{transform_indices = @transform_0, window_bounds = array<i64: 1, 32, 256>}, {pipeline_mode = #tpu.pipeline_mode<synchronous>, transform_indices = @transform_1, window_bounds = array<i64: 32, 8>}, {pipeline_mode = #tpu.pipeline_mode<synchronous>, transform_indices = @transform_2, window_bounds = array<i64: 8, 32>}, {transform_indices = @transform_3, window_bounds = array<i64: 1, 32, 256>}]} {
    %c0 = arith.constant 0 : index
    %c0_0 = arith.constant 0 : index
    %c0_1 = arith.constant 0 : index
    %0 = vector.load %arg1[%c0, %c0_0, %c0_1] : memref<1x32x256xf32, #tpu.memory_space<vmem>>, vector<1x32x256xf32>
    %cst = arith.constant dense<0.000000e+00> : vector<1x32xf32>
    %1 = vector.multi_reduction <add>, %0, %cst [2] : vector<1x32x256xf32> to vector<1x32xf32>
    %cst_2 = arith.constant 3.906250e-03 : f32
    %2 = vector.broadcast %cst_2 : f32 to vector<1x32xf32>
    %3 = arith.mulf %1, %2 : vector<1x32xf32>
    %c0_3 = arith.constant 0 : index
    %c0_4 = arith.constant 0 : index
    %4 = vector.load %arg2[%c0_3, %c0_4] : memref<32x8xf32, #tpu.memory_space<vmem>>, vector<32x8xf32>
    %cst_5 = arith.constant dense<0.000000e+00> : vector<1x8xf32>
    %5 = tpu.matmul %3, %4, %cst_5 {dimension_numbers = #tpu.dot_dimension_numbers<[1], [0], [0], [1], [0, 0, 1, 1], [], []>} : vector<1x32xf32>, vector<32x8xf32>, vector<1x8xf32> -> vector<1x8xf32>
    %6 = arith.negf %5 : vector<1x8xf32>
    %7 = math.exp %6 : vector<1x8xf32>
    %cst_6 = arith.constant 1.000000e+00 : f32
    %8 = vector.broadcast %cst_6 : f32 to vector<1x8xf32>
    %9 = arith.addf %8, %7 : vector<1x8xf32>
    %10 = arith.divf %8, %9 : vector<1x8xf32>
    %11 = arith.mulf %5, %10 : vector<1x8xf32>
    %c0_7 = arith.constant 0 : index
    %c0_8 = arith.constant 0 : index
    %12 = vector.load %arg3[%c0_7, %c0_8] : memref<8x32xf32, #tpu.memory_space<vmem>>, vector<8x32xf32>
    %cst_9 = arith.constant dense<0.000000e+00> : vector<1x32xf32>
    %13 = tpu.matmul %11, %12, %cst_9 {dimension_numbers = #tpu.dot_dimension_numbers<[1], [0], [0], [1], [0, 0, 1, 1], [], []>} : vector<1x8xf32>, vector<8x32xf32>, vector<1x32xf32> -> vector<1x32xf32>
    %14 = arith.negf %13 : vector<1x32xf32>
    %15 = math.exp %14 : vector<1x32xf32>
    %cst_10 = arith.constant 1.000000e+00 : f32
    %16 = vector.broadcast %cst_10 : f32 to vector<1x32xf32>
    %17 = arith.addf %16, %15 : vector<1x32xf32>
    %18 = arith.divf %16, %17 : vector<1x32xf32>
    %19 = vector.shape_cast %18 : vector<1x32xf32> to vector<1x32x1xf32>
    %20 = vector.broadcast %19 : vector<1x32x1xf32> to vector<1x32x256xf32>
    %21 = arith.mulf %0, %20 : vector<1x32x256xf32>
    %c0_11 = arith.constant 0 : index
    %c0_12 = arith.constant 0 : index
    %c0_13 = arith.constant 0 : index
    %22 = vector.load %arg4[%c0_11, %c0_12, %c0_13] : memref<1x32x256xf32, #tpu.memory_space<vmem>>, vector<1x32x256xf32>
    tpu.vector_store %arg4[%c0_11, %c0_12, %c0_13], %21 {strides = array<i32>} : memref<1x32x256xf32, #tpu.memory_space<vmem>>, vector<1x32x256xf32>,
    return
  }
  func.func @transform_0(%arg0: i32) -> (i32, i32, i32) {
    %c0_i32 = arith.constant 0 : i32
    %c0_i32_0 = arith.constant 0 : i32
    %c0_i32_1 = arith.constant 0 : i32
    return %arg0, %c0_i32, %c0_i32_0 : i32, i32, i32
  }
  func.func @transform_1(%arg0: i32) -> (i32, i32) {
    %c0_i32 = arith.constant 0 : i32
    %c0_i32_0 = arith.constant 0 : i32
    %c0_i32_1 = arith.constant 0 : i32
    return %c0_i32, %c0_i32_0 : i32, i32
  }
  func.func @transform_2(%arg0: i32) -> (i32, i32) {
    %c0_i32 = arith.constant 0 : i32
    %c0_i32_0 = arith.constant 0 : i32
    %c0_i32_1 = arith.constant 0 : i32
    return %c0_i32, %c0_i32_0 : i32, i32
  }
  func.func @transform_3(%arg0: i32) -> (i32, i32, i32) {
    %c0_i32 = arith.constant 0 : i32
    %c0_i32_0 = arith.constant 0 : i32
    %c0_i32_1 = arith.constant 0 : i32
    return %arg0, %c0_i32, %c0_i32_0 : i32, i32, i32
  }
}

</mosaic_0001>

<bundles_post_ra>
// kernel: tpu_custom_call.1
= control target key start
LH: loop header
LB: loop body
LE: loop exit
PB: predicated region body
PF: predicated region fallthrough
CT: control target
= control target key end

     0   :  { %8 = vsyncpa [#allocation3], 0  ;;  %s981_s0 = inlined_call_operand.hbm [shape: f32[2,32,256], index: 0, kind: input, shape index: {}]   ;;  %s982_s1 = inlined_call_operand.vmem [shape: f32[32,8], index: 1, kind: input, shape index: {}]   ;;  %s983_s2 = inlined_call_operand.vmem [shape: f32[8,32], index: 2, kind: input, shape index: {}]   ;;  %s984_s3 = inlined_call_operand.hbm [shape: f32[2,32,256], index: 3, kind: output, shape index: {}]  }
   0x1   :  { %10 = vsyncpa [#allocation3 + $0x1], 0 }
   0x2   :  { %11 = vsyncpa [#allocation4], 0 }
   0x3   :  { %13 = vsyncpa [#allocation4 + $0x1], 0  ;;  %s768_s12 = smov 0   ;;  %s770_s13 = smov 0  }
   0x4   :  { %s772_s14 = smov 0   ;;  %s774_s15 = smov 0  }
   0x5 LB: > { %s789_s16 = sadd.s32 4294967295, %s737_s15   ;;  %s531_s17 = sadd.s32 4294967294, %s737_s15   ;;  %s737_s15 = sphi %s774_s15, %s997_s15   ;;  %s733_s14 = sphi %s772_s14, %s996_s14   ;;  %s729_s13 = sphi %s770_s13, %s995_s13   ;;  %s725_s12 = sphi %s768_s12, %s994_s12  }
   0x6   : > { %s793_s18 = sadd.s32 1, %s737_s15   ;;  %s26_s19 = sadd.s32 1, %s733_s14 }
   0x7   : > { %s23_s20 = ssub.s32 %s737_s15, %s793_s18  ;;  %p33_p0 = scmp.ne.s32.totalorder %s733_s14, %s729_s13 }
   0x8   : > { %p24_p1 = scmp.eq.s32.totalorder %s23_s20, 0  ;;  %p34_p2 = scmp.eq.s32.totalorder %s737_s15, 0 }
   0x9   : > { %p39_p3 = scmp.ne.s32.totalorder %s729_s13, %s725_s12  ;;  %p40_p4 = scmp.eq.s32.totalorder %s789_s16, 0 }
   0xa   : > { %s805_s21 = scalar_select %p24_p1, %s733_s14, %s26_s19  }
   0xb   : > { %p807_p5 = por %p34_p2, %p33_p0  ;;  %p811_p6 = por %p40_p4, %p39_p3 }
   0xc   : > { %p105_p7 = scmp.eq.s32.totalorder %s789_s16, 1  ;;  %p111_p8 = scmp.eq.s32.totalorder %s531_s17, 1 }
   0xd   : > { %p592_p10 = scmp.lt.s32.totalorder %s737_s15, 2  ;;  %s137_s26 = sand.u32 1, %s733_s14  }
   0xe   : > { %p818_p11 = por %p105_p7, %p33_p0  ;;  %p822_p12 = por %p111_p8, %p39_p3 }
   0xf   : > { %s549_s27 = sshll.u32 %s737_s15, 10  ;;  %s534_s28 = sshll.u32 %s137_s26, 6 }
  0x10   : > { %s988_s24 = scalar_select %p818_p11, 1, 0 }
  0x11   : > { %s989_s25 = scalar_select %p822_p12, 1, 0 }
  0x12   : > { %s831_s4 = scalar_lea.hbm %s981_s0, %s549_s27  ;;  %s141_s5 = scalar_lea.vmem [#allocation2], %s534_s28 }
  0x13   : > { %s148_s6 = sshll.u32 %s141_s5, 4  ;;  %p835_p13 = pnand %p592_p10, %p807_p5  ;;  %s839_s6 = int_to_ptr.vmem [resolvable:$true] %s148_s6 }
  0x14   : > { %s841_s8 = scalar_lea.sflag [#allocation3], %s137_s26  ;;  %s641_s9 = scalar_lea.hbm %s831_s4, 1024 }
  0x15   : > { %p642_p0 = scmp.ne.s32.totalorder %s831_s4, %s641_s9  ;;  %p643_p1 = pneg %p835_p13 }
  0x16   : > { %s646_s17 = scalar_lea.hbm %s981_s0, 2048  ;;  %p647_p4 = scmp.lt.u32.totalorder %s831_s4, %s981_s0 }
  0x17   : > { %p644_p2 = pnand %p643_p1, %p642_p0  ;;  %p648_p5 = scmp.lt.u32.totalorder %s646_s17, %s641_s9 }
  0x18   : > { %p650_p8 = scmp.lt.u32.totalorder %s641_s9, %s831_s4 }
  0x19   : > { %p645_p3 = pneg %p644_p2  ;;  %p649_p7 = por %p648_p5, %p647_p4 }
  0x1b   : > { %p651_p10 = por %p650_p8, %p649_p7 }
  0x1d   : > { %p652_p9 = pnand %p651_p10, %p645_p3 }
  0x1f   : > { %655 = shalt.err (!%p652_p9)
}
  0x20   : > { %s656_s22 = scalar_lea.vmem %s839_s6, 1024  ;;  %s739_s26 = smov [#allocation2]  }
  0x21   : > { %p657_p0 = scmp.ne.s32.totalorder %s839_s6, %s656_s22  ;;  %s661_s27 = sshll.u32 %s739_s26, 4  ;;  %s662_s27 = int_to_ptr.vmem [resolvable:$false] %s661_s27 }
  0x22   : > { %s663_s28 = scalar_lea.vmem %s662_s27, 2048  ;;  %p664_p11 = scmp.lt.s32.totalorder %s839_s6, %s662_s27 }
  0x23   : > { %p659_p2 = pnand %p657_p0, %p643_p1  ;;  %p665_p4 = scmp.lt.s32.totalorder %s663_s28, %s656_s22 }
  0x25   : > { %p660_p12 = pneg %p659_p2  ;;  %p666_p5 = por %p665_p4, %p664_p11 }
  0x27   : > { %p667_p7 = pnand %p666_p5, %p660_p12 }
  0x29   : > { %670 = shalt.err (!%p667_p7)
}
  0x2a   : > { %s740_s29 = smov 256   ;;  %s741_s30 = smov 16  }
  0x2b   : > { %587 = dma.hbm_to_vmem [thread:$0]  (!%p835_p13), %s831_s4, 1024, %s839_s6, %s841_s8, %s740_s29, %s740_s29, %s741_s30  }
  0x2c   : > { %p537_p9 = scmp.ge.s32.totalorder %s737_s15, 1  ;;  %p156_p1 = scmp.lt.s32.totalorder %s737_s15, 3 }
  0x2e   : > { %p157_p3 = pnand %p537_p9, %p156_p1 }
  0x2f   : > { %s872_s5 = sand.u32 (!%p157_p3), 1, %s729_s13  }
  0x30   : > { %160 = sbr.rel (%p157_p3) target bundleno = 832 (0x340), region = 32  ;;  %s538_s9 = sshll.u32 (!%p157_p3), %s872_s5, 6 }
  0x31   : > { %s163_s10 = scalar_lea.sflag (!%p157_p3), [#allocation3], %s872_s5  ;;  %s166_s11 = scalar_lea.vmem (!%p157_p3), [#allocation2], %s538_s9 }
  0x37   : > { %716 = dma.done.wait (%p811_p6), %s163_s10, 1024  }
  0x38   : > { %718 = vsyncadd (%p811_p6), %s163_s10, 4294966272  ;;  %v882_v0 = vld [vmem:[%s166_s11] sm:$0xff]  ;;  %v884_v1 = vld [vmem:[%s166_s11 + $0x8] sm:$0xff]  ;;  %v742_v15 = vmov 0.0|0.0   ;;  %vm743_vm0 = vmmov 0   ;;  %v744_v19 = vmov 0.0   ;;  %v221_v20 = vlaneseq }
  0x39   : > { %v886_v2 = vld [vmem:[%s166_s11 + $0x20] sm:$0xff]  ;;  %v197_v3 = vadd.f32 %v884_v1, %v882_v0  ;;  %v890_v4 = vld [vmem:[%s166_s11 + $0x28] sm:$0xff]  ;;  %v892_v5 = vld [vmem:[%s166_s11 + $0x10] sm:$0xff]  ;;  %574 = vmatprep.subr.bf16.mxu0 %v742_v15  ;;  %566 = vmatprep.mubr.msk.f32.mxu0 %vm743_vm0, %v744_v19  ;;  %vm232_vm1 = vcmask 130112   ;;  %vm239_vm2 = vcmask 195712   ;;  %vm246_vm3 = vcmask 261312  }
  0x3a   : > { %v894_v6 = vld [vmem:[%s166_s11 + $0x18] sm:$0xff]  ;;  %v203_v7 = vadd.f32 %v890_v4, %v886_v2  ;;  %v898_v8 = vld [vmem:[%s166_s11 + $0x30] sm:$0xff]  ;;  %v213_v12 = vld [vmem:[%s982_s1] sm:$0xff]  ;;  %569 = vmatprep.subr.mxu1 %v744_v19  ;;  %571 = vmatprep.mubr.msk.f32.mxu1 %vm743_vm0, %v744_v19  ;;  %v222_v21 = vand.u32 127, %v221_v20  ;;  %v224_v22 = vshrl.u32 %v221_v20, 7  ;;  %vm248_vm4 = vcmask 261120  }
  0x3b   : > { %v900_v9 = vld [vmem:[%s166_s11 + $0x38] sm:$0xff]  ;;  %198 = vadd.xlane.f32.xlu0 %v197_v3  ;;  %v200_v10 = vadd.f32 %v894_v6, %v892_v5  ;;  %v214_v13 = vld [vmem:[%s982_s1 + $0x8] sm:$0xff]  ;;  %v215_v16 = vld [vmem:[%s982_s1 + $0x10] sm:$0xff]  ;;  %vm329_vm5 = vcmask 64512   ;;  %s188_s27 = scalar_lea.vmem [#allocation5], %s538_s9  ;;  %s550_s29 = sshll.u32 %s789_s16, 10 }
  0x3c   : > { %204 = vadd.xlane.f32.xlu1 %v203_v7  ;;  %v206_v11 = vadd.f32 %v900_v9, %v898_v8  ;;  %v575_v14 = vpack.c.bf16 %v214_v13, %v213_v12  ;;  %v216_v17 = vld [vmem:[%s982_s1 + $0x18] sm:$0xff]  ;;  %v227_v23 = vadd.s32 4294967288, %v222_v21  ;;  %v234_v25 = vadd.s32 4294967280, %v222_v21  ;;  %v328_v45 = vld [vmem:[%s983_s2] sm:$0xff]  ;;  %s458_s28 = sshll.u32 %s188_s27, 4  ;;  %s935_s10 = scalar_lea.hbm %s984_s3, %s550_s29  ;;  %s930_s28 = int_to_ptr.vmem [resolvable:$true] %s458_s28 }
  0x3d   : > { %v578_v18 = vpack.c.bf16 %v216_v17, %v215_v16  ;;  %v241_v26 = vadd.s32 4294967272, %v222_v21  ;;  %v225_v28 = vsub.s32 %v222_v21, %v224_v22  ;;  %570 = vmatpush3.msra.mxu1 %v328_v45  ;;  %v411_v58 = vsub.s32 0, %v224_v22  ;;  %s445_s16 = scalar_lea.sflag [#allocation4], %s872_s5  ;;  %s671_s11 = scalar_lea.vmem %s930_s28, 1024 }
  0x3e   : > { %576 = vmatpush3.bf16.msra.mxu0 %v575_v14  ;;  %v230_v30 = vsub.s32 %v227_v23, %v224_v22  ;;  %v237_v31 = vsub.s32 %v234_v25, %v224_v22  ;;  %p672_p6 = scmp.ne.s32.totalorder %s930_s28, %s671_s11  ;;  %p991_p11 = scmp.ne.s32.totalorder %s988_s24, 0 }
  0x3f   : > { %201 = vadd.xlane.f32.xlu0 %v200_v10  ;;  %577 = vmatprep.subr.bf16.mxu0 %v742_v15  ;;  %v244_v34 = vsub.s32 %v241_v26, %v224_v22  ;;  %s745_s23 = smov [#allocation5]  }
  0x40   : > { %207 = vadd.xlane.f32.xlu1 %v206_v11  ;;  %p673_p12 = pnand %p672_p6, %p991_p11  ;;  %s675_s4 = sshll.u32 %s745_s23, 4  ;;  %s676_s4 = int_to_ptr.vmem [resolvable:$false] %s675_s4 }
  0x41   : > { %s677_s6 = scalar_lea.vmem %s676_s4, 2048  ;;  %p678_p8 = scmp.lt.s32.totalorder %s930_s28, %s676_s4 }
  0x42   : > { %579 = vmatpush3.bf16.msra.mxu0 %v578_v18  ;;  %p674_p13 = pneg %p673_p12  ;;  %p679_p10 = scmp.lt.s32.totalorder %s677_s6, %s671_s11 }
  0x44   : > { %p680_p0 = por %p679_p10, %p678_p8 }
  0x46   : > { %p681_p2 = pnand %p680_p0, %p674_p13 }
  0xc8   : > { %v199_v24 = vpop.xlane.xlu0 %198 }
  0xc9   : > { %v205_v27 = vpop.xlane.xlu1 %204  ;;  %v209_v29 = vmul.f32 0.00390625, %v199_v24 }
  0xca   : > { %v211_v32 = vmul.f32 0.00390625, %v205_v27 }
  0xcb   : > { %v226_v38 = vrot.slane %v209_v29, %v225_v28 }
  0xcc   : > { %v202_v33 = vpop.xlane.xlu0 %201  ;;  %v238_v40 = vrot.slane %v211_v32, %v237_v31 }
  0xcd   : > { %v210_v35 = vmul.f32 0.00390625, %v202_v33  ;;  %v208_v36 = vpop.xlane.xlu1 %207 }
  0xce   : > { %v212_v37 = vmul.f32 0.00390625, %v208_v36 }
  0xcf   : > { %v231_v39 = vrot.slane %v210_v35, %v230_v30 }
  0xd0   : > { %v245_v41 = vrot.slane %v212_v37, %v244_v34 }
  0xd1   : > { %v233_v42 = vsel %vm232_vm1, %v231_v39, %v226_v38 }
  0xd2   : > { %v240_v43 = vsel %vm239_vm2, %v238_v40, %v233_v42 }
  0xd3   : > { %v247_v44 = vsel %vm246_vm3, %v245_v41, %v240_v43 }
  0xd4   : > { %567 = vmatmul.mubr.msk.f32.vlgmr.msra.gmra.mrb[0].mxu0 %vm248_vm4, %v247_v44 }
 0x1a7   : > { %v317_v46 = vpop.f32.mrb[0].mxu0 }
 0x1a8   : > { %v541_v47 = vmul.f32 -1.442695, %v317_v46  ;;  %v568_v48 = vpop.f32.mrb[1].mxu0 }
 0x1aa   : > { %633 = vpow2.f32 %v541_v47 }
 0x1b4   : > { %v634_v49 = vpop.eup %633 }
 0x1b5   : > { %v324_v50 = vadd.f32 1.0, %v634_v49 }
 0x1b7   : > { %635 = vrcp.f32 %v324_v50 }
 0x1c1   : > { %v636_v51 = vpop.eup %635 }
 0x1c2   : > { %v327_v52 = vmul.f32 %v636_v51, %v317_v46 }
 0x1c4   : > { %572 = vmatmul.mubr.msk.f32.vlgmr.msra.gmra.mrb[0].mxu1 %vm329_vm5, %v327_v52 }
 0x297   : > { %v399_v53 = vpop.f32.mrb[0].mxu1 }
 0x298   : > { %v543_v54 = vmul.f32 -1.442695, %v399_v53  ;;  %v573_v55 = vpop.f32.mrb[1].mxu1 }
 0x29a   : > { %637 = vpow2.f32 %v543_v54 }
 0x2a4   : > { %v638_v56 = vpop.eup %637 }
 0x2a5   : > { %v406_v57 = vadd.f32 1.0, %v638_v56 }
 0x2a7   : > { %639 = vrcp.f32 %v406_v57 }
 0x2b1   : > { %v640_v59 = vpop.eup %639 }
 0x2b2   : > { %v412_v60 = vrot.slane %v640_v59, %v411_v58 }
 0x2b4   : > { %418 = vbcast.lane.b32.xlu1 %v412_v60, 264  ;;  %414 = vbcast.lane.b32.xlu0 %v412_v60, 256 }
 0x2b8   : > { %422 = vbcast.lane.b32.xlu1 %v412_v60, 272 }
 0x2bc   : > { %426 = vbcast.lane.b32.xlu1 %v412_v60, 280 }
 0x326   : > { %v419_v61 = vpop.permute.xlu1 %418  ;;  %v415_v62 = vpop.permute.xlu0 %414 }
 0x327   : > { %v430_v63 = vmul.f32 %v419_v61, %v892_v5  ;;  %v431_v3 = vmul.f32 %v419_v61, %v894_v6  ;;  %v428_v7 = vmul.f32 %v415_v62, %v882_v0  ;;  %v429_v10 = vmul.f32 %v415_v62, %v884_v1 }
 0x329   : > { %438 = vst [vmem:[%s188_s27 + $0x10] sm:$0xff] %v430_v63  ;;  %439 = vst [vmem:[%s188_s27 + $0x18] sm:$0xff] %v431_v3 }
 0x32a   : > { %436 = vst [vmem:[%s188_s27] sm:$0xff] %v428_v7  ;;  %437 = vst [vmem:[%s188_s27 + $0x8] sm:$0xff] %v429_v10  ;;  %v423_v11 = vpop.permute.xlu1 %422 }
 0x32b   : > { %v432_v12 = vmul.f32 %v423_v11, %v886_v2  ;;  %v433_v5 = vmul.f32 %v423_v11, %v890_v4 }
 0x32d   : > { %440 = vst [vmem:[%s188_s27 + $0x20] sm:$0xff] %v432_v12  ;;  %441 = vst [vmem:[%s188_s27 + $0x28] sm:$0xff] %v433_v5 }
 0x32e   : > { %v427_v0 = vpop.permute.xlu1 %426 }
 0x32f   : > { %v434_v1 = vmul.f32 %v427_v0, %v898_v8  ;;  %v435_v2 = vmul.f32 %v427_v0, %v900_v9 }
 0x331   : > { %442 = vst [vmem:[%s188_s27 + $0x30] sm:$0xff] %v434_v1  ;;  %443 = vst [vmem:[%s188_s27 + $0x38] sm:$0xff] %v435_v2 }
 0x332   : > { %684 = shalt.err (!%p681_p2)
}
 0x333   : > { %s685_s7 = scalar_lea.hbm %s935_s10, 1024  ;;  %s689_s19 = scalar_lea.hbm %s984_s3, 2048 }
 0x334   : > { %p686_p4 = scmp.ne.s32.totalorder %s935_s10, %s685_s7  ;;  %p690_p9 = scmp.lt.u32.totalorder %s935_s10, %s984_s3 }
 0x335   : > { %p691_p1 = scmp.lt.u32.totalorder %s689_s19, %s685_s7  ;;  %p693_p6 = scmp.lt.u32.totalorder %s685_s7, %s935_s10 }
 0x336   : > { %p687_p5 = pnand %p686_p4, %p991_p11 }
 0x337   : > { %p692_p3 = por %p691_p1, %p690_p9 }
 0x338   : > { %p688_p7 = pneg %p687_p5 }
 0x339   : > { %p694_p12 = por %p693_p6, %p692_p3 }
 0x33b   : > { %p695_p13 = pnand %p694_p12, %p688_p7 }
 0x33d   : > { %698 = shalt.err (!%p695_p13)
}
 0x33e   : > { %s746_s26 = smov 256   ;;  %s747_s27 = smov 16  }
 0x33f   : > { %582 = dma.vmem_to_hbm [thread:$0]  (%p991_p11), %s930_s28, 1024, %s935_s10, %s445_s16, %s746_s26, %s746_s26, %s747_s27  }
 0x340 PF: > { %s473_s29 = sand.u32 1, %s725_s12   ;;  %p992_p8 = scmp.ne.s32.totalorder %s989_s25, 0 }
 0x341   : > { %p993_p10 = scmp.ge.s32.totalorder %s737_s15, 2  ;;  %s474_s30 = scalar_lea.sflag [#allocation4], %s473_s29 }
 0x343   : > { %p589_p0 = pnand %p993_p10, %p992_p8 }
 0x345   : > { %720 = dma.done.wait (!%p589_p0), %s474_s30, 1024  }
 0x346   : > { %722 = vsyncadd (!%p589_p0), %s474_s30, 4294966272  ;;  %p16_p2 = scmp.ge.s32.totalorder %s793_s18, 4   ;;  %s994_s12 = smov %s729_s13 }
 0x347   : > { %s995_s13 = smov %s733_s14  ;;  %s996_s14 = smov %s805_s21 }
 0x348   : > { %s997_s15 = smov %s793_s18  ;;  %18 = sbr.rel (!%p16_p2) target bundleno = 5 (0x5), region = 77 }
 0x34f   :  { %479 = vsyncpa [#allocation3], 1 }
 0x350   :  { %481 = vsyncpa [#allocation3 + $0x1], 1 }
 0x351   :  { %482 = vsyncpa [#allocation4], 1 }
 0x352   :  { %484 = vsyncpa [#allocation4 + $0x1], 1 }

</bundles_post_ra>
